<compile_context>
chip_gen: v5e
topology: v5e:2x2
jax: 0.10.0
libtpu: 0.0.40
codegen_flags: <defaults>
</compile_context>

<pallas_src>
import functools

import jax
import jax.numpy as jnp
from jax.experimental import pallas as pl
from jax.experimental.pallas import tpu as pltpu


def _focal_loss_kernel(preds_ref, labels_ref, alpha_ref, out_ref, *, gamma, n_valid):
    i = pl.program_id(0)

    logits = preds_ref[...].astype(jnp.float32)   # (C, TN)  cast in-kernel (native HBM dtype)
    labels = labels_ref[...]                      # (1, TN)  int32
    alpha = alpha_ref[...].astype(jnp.float32)    # (C, 1)

    c, tn = logits.shape

    # Validity mask for the ragged last tile (no wrapper-side padding).
    lane = jax.lax.broadcasted_iota(jnp.int32, (1, tn), 1)
    col = i * tn + lane
    valid = col < n_valid                          # (1, TN) bool

    # Sanitize garbage columns BEFORE exp so inf/NaN cannot poison the sums.
    logits = jnp.where(valid, logits, 0.0)

    # Numerically stable log-softmax over the class (sublane) axis.
    # The full softmax is never materialized: p_t = exp(logp_t).
    m = jnp.max(logits, axis=0, keepdims=True)     # (1, TN)
    shifted = logits - m
    denom = jnp.sum(jnp.exp(shifted), axis=0, keepdims=True)
    logp = shifted - jnp.log(denom)                # (C, TN)

    # gather(1, labels) via one-hot masked reduce; alpha is fused into the same
    # reduce (onehot is one-hot, so sum(onehot*alpha*logp) == alpha_t*logp_t).
    class_iota = jax.lax.broadcasted_iota(jnp.int32, (c, tn), 0)
    onehot = (class_iota == labels).astype(jnp.float32)         # (C, TN)
    oh_logp = onehot * logp
    logp_t = jnp.sum(oh_logp, axis=0, keepdims=True)            # (1, TN)
    a_logp_t = jnp.sum(alpha * oh_logp, axis=0, keepdims=True)  # alpha_t * logp_t

    p_t = jnp.exp(logp_t)
    one_minus = jnp.maximum(1.0 - p_t, 0.0)        # clamp: no NaN for fractional gamma

    # Static small-integer gamma -> explicit multiplies (gamma=2 -> x*x).
    if float(gamma) == int(gamma) and int(gamma) >= 0:
        g = int(gamma)
        if g == 0:
            pw = jnp.ones_like(one_minus)
        else:
            pw = one_minus
            for _ in range(g - 1):
                pw = pw * one_minus
    else:
        pw = jnp.power(one_minus, float(gamma))

    loss = -a_logp_t * pw                                       # (1, TN)
    partial = jnp.sum(jnp.where(valid, loss, 0.0))              # one cross-lane reduce / tile

    # Per-tile partial into a lane-dense output block (exact: only lane 0 carries it).
    lane_out = jax.lax.broadcasted_iota(jnp.int32, (1, 1, 128), 2)
    out_ref[...] = jnp.where(lane_out == 0, partial, jnp.float32(0.0))


def focal_loss_pallas(preds, labels, alpha, *, gamma=2, size_average=True,
                      tile_n=4096):
    """preds: (..., C) float; labels: (...) int; alpha: (C,) float -> scalar loss."""
    c = preds.shape[-1]
    preds2 = preds.reshape(-1, c)
    n = preds2.shape[0]

    # Lane-dense layout: samples on the 128-lane axis (classes are few).
    preds_t = preds2.T                                  # (C, N), native dtype (no astype pass)
    labels2 = labels.reshape(1, -1).astype(jnp.int32)   # (1, N)
    alpha2 = alpha.reshape(c, 1).astype(jnp.float32)    # (C, 1)

    assert tile_n % 128 == 0, "tile_n must be a multiple of 128 (lane width)"
    tile = n if n <= tile_n else tile_n                 # small N -> single full-extent block
    grid_n = pl.cdiv(n, tile)

    kernel = functools.partial(_focal_loss_kernel, gamma=gamma, n_valid=n)

    # Advisory cost hint for XLA's scheduler around the custom call.
    bytes_in = n * c * preds.dtype.itemsize + n * 4 + c * 4
    cost = pl.CostEstimate(
        flops=int(12 * c * n),                 # shift/exp-sum/one-hot reduces (rough)
        transcendentals=int((c + 2) * n),      # exp(shifted), log(denom), exp(logp_t)
        bytes_accessed=int(bytes_in + grid_n * 128 * 4),
    )

    partials = pl.pallas_call(
        kernel,
        out_shape=jax.ShapeDtypeStruct((grid_n, 1, 128), jnp.float32),
        grid=(grid_n,),
        in_specs=[
            pl.BlockSpec((c, tile), lambda i: (0, i)),   # preds tile (lane-dense)
            pl.BlockSpec((1, tile), lambda i: (0, i)),   # labels tile (lane-dense)
            pl.BlockSpec((c, 1), lambda i: (0, 0)),      # alpha (resident, constant map)
        ],
        out_specs=pl.BlockSpec((1, 1, 128), lambda i: (i, 0, 0)),
        compiler_params=pltpu.CompilerParams(
            dimension_semantics=("parallel",)),          # v7x: shard tiles across 2 TCs
        cost_estimate=cost,
    )(preds_t, labels2, alpha2)

    total = jnp.sum(partials)                            # tiny final reduce in plain JAX
    if size_average:
        total = total / jnp.float32(n)
    return total


def _focal_loss_ref(preds, labels, alpha, gamma=2, size_average=True):
    """Pure-JAX reference, same math as the PyTorch forward."""
    c = preds.shape[-1]
    p2 = preds.reshape(-1, c).astype(jnp.float32)
    l2 = labels.reshape(-1)
    lsm = jax.nn.log_softmax(p2, axis=1)
    rows = jnp.arange(p2.shape[0])
    logp_t = lsm[rows, l2]
    p_t = jnp.exp(logp_t)
    a_t = alpha[l2]
    loss = -a_t * (1.0 - p_t) ** gamma * logp_t
    return jnp.mean(loss) if size_average else jnp.sum(loss)


if __name__ == "__main__":
    key = jax.random.PRNGKey(0)
    batch, seq, num_classes = 2, 8, 3
    kp, kl, kp2, kl2 = jax.random.split(key, 4)

    preds = jax.random.normal(kp, (batch, seq, num_classes), dtype=jnp.float32)
    labels = jax.random.randint(kl, (batch, seq), 0, num_classes, dtype=jnp.int32)

    # Deterministic alpha init, matching focal_loss.__init__ with scalar alpha=0.25:
    #   alpha[0] = 0.25, alpha[1:] = 0.75
    alpha_scalar = 0.25
    alpha = jnp.zeros((num_classes,), jnp.float32)
    alpha = alpha.at[0].add(alpha_scalar)
    alpha = alpha.at[1:].add(1.0 - alpha_scalar)

    # Test 1: size_average=True, single-block path.
    loss = focal_loss_pallas(preds, labels, alpha, gamma=2, size_average=True)
    loss = jax.block_until_ready(loss)
    ref = _focal_loss_ref(preds, labels, alpha, gamma=2, size_average=True)
    assert jnp.allclose(loss, ref, rtol=1e-5, atol=1e-6), (float(loss), float(ref))

    # Test 2: multi-tile grid + ragged tail (no wrapper padding), size_average=False.
    n2 = 300
    preds_b = jax.random.normal(kp2, (n2, num_classes), dtype=jnp.float32)
    labels_b = jax.random.randint(kl2, (n2,), 0, num_classes, dtype=jnp.int32)
    loss_b = focal_loss_pallas(preds_b, labels_b, alpha, gamma=2,
                               size_average=False, tile_n=128)
    loss_b = jax.block_until_ready(loss_b)
    ref_b = _focal_loss_ref(preds_b, labels_b, alpha, gamma=2, size_average=False)
    assert jnp.allclose(loss_b, ref_b, rtol=1e-5, atol=1e-5), (float(loss_b), float(ref_b))

    print("KERNEL_OK")
</pallas_src>

<mosaic_0001>
module attributes {stable_mosaic.version = 11 : i64} {
  func.func @_focal_loss_kernel(%arg0: i32, %arg1: memref<3x16xf32, #tpu.memory_space<vmem>>, %arg2: memref<1x16xi32, #tpu.memory_space<vmem>>, %arg3: memref<3x1xf32, #tpu.memory_space<vmem>>, %arg4: memref<1x1x128xf32, #tpu.memory_space<vmem>>) attributes {dimension_semantics = [#tpu.dimension_semantics<parallel>], iteration_bounds = array<i64: 1>, scalar_prefetch = 0 : i64, scratch_operands = 0 : i64, tpu.core_type = #tpu.core_type<tc>, window_params = [{transform_indices = @transform_0, window_bounds = array<i64: 3, 16>}, {transform_indices = @transform_1, window_bounds = array<i64: 1, 16>}, {pipeline_mode = #tpu.pipeline_mode<synchronous>, transform_indices = @transform_2, window_bounds = array<i64: 3, 1>}, {transform_indices = @transform_3, window_bounds = array<i64: 1, 1, 128>}]} {
    %c0 = arith.constant 0 : index
    %c0_0 = arith.constant 0 : index
    %0 = vector.load %arg1[%c0, %c0_0] : memref<3x16xf32, #tpu.memory_space<vmem>>, vector<3x16xf32>
    %c0_1 = arith.constant 0 : index
    %c0_2 = arith.constant 0 : index
    %1 = vector.load %arg2[%c0_1, %c0_2] : memref<1x16xi32, #tpu.memory_space<vmem>>, vector<1x16xi32>
    %c0_3 = arith.constant 0 : index
    %c0_4 = arith.constant 0 : index
    %2 = vector.load %arg3[%c0_3, %c0_4] : memref<3x1xf32, #tpu.memory_space<vmem>>, vector<3x1xf32>
    %3 = tpu.iota {dimensions = array<i32: 1>} : vector<1x16xi32>
    %c16_i32 = arith.constant 16 : i32
    %4 = arith.muli %arg0, %c16_i32 : i32
    %5 = vector.broadcast %4 : i32 to vector<1x16xi32>
    %6 = arith.addi %5, %3 : vector<1x16xi32>
    %c16_i32_5 = arith.constant 16 : i32
    %7 = vector.broadcast %c16_i32_5 : i32 to vector<1x16xi32>
    %8 = arith.cmpi slt, %6, %7 : vector<1x16xi32>
    %cst = arith.constant 0.000000e+00 : f32
    %9 = vector.shape_cast %8 : vector<1x16xi1> to vector<1x16xi1>
    %10 = vector.broadcast %9 : vector<1x16xi1> to vector<3x16xi1>
    %11 = vector.broadcast %cst : f32 to vector<3x16xf32>
    %12 = arith.select %10, %0, %11 : vector<3x16xi1>, vector<3x16xf32>
    %cst_6 = arith.constant dense<0xFF800000> : vector<16xf32>
    %13 = vector.multi_reduction <maximumf>, %12, %cst_6 [0] : vector<3x16xf32> to vector<16xf32>
    %14 = vector.shape_cast %13 : vector<16xf32> to vector<1x16xf32>
    %15 = vector.broadcast %14 : vector<1x16xf32> to vector<3x16xf32>
    %16 = arith.subf %12, %15 : vector<3x16xf32>
    %17 = math.exp %16 : vector<3x16xf32>
    %cst_7 = arith.constant dense<0.000000e+00> : vector<16xf32>
    %18 = vector.multi_reduction <add>, %17, %cst_7 [0] : vector<3x16xf32> to vector<16xf32>
    %19 = vector.shape_cast %18 : vector<16xf32> to vector<1x16xf32>
    %20 = math.log %19 : vector<1x16xf32>
    %21 = vector.broadcast %20 : vector<1x16xf32> to vector<3x16xf32>
    %22 = arith.subf %16, %21 : vector<3x16xf32>
    %23 = tpu.iota {dimensions = array<i32: 0>} : vector<3x16xi32>
    %24 = vector.broadcast %1 : vector<1x16xi32> to vector<3x16xi32>
    %25 = arith.cmpi eq, %23, %24 : vector<3x16xi32>
    %26 = arith.extui %25 : vector<3x16xi1> to vector<3x16xi32>
    %27 = arith.sitofp %26 : vector<3x16xi32> to vector<3x16xf32>
    %28 = arith.mulf %27, %22 : vector<3x16xf32>
    %cst_8 = arith.constant dense<0.000000e+00> : vector<16xf32>
    %29 = vector.multi_reduction <add>, %28, %cst_8 [0] : vector<3x16xf32> to vector<16xf32>
    %30 = vector.shape_cast %29 : vector<16xf32> to vector<1x16xf32>
    %31 = vector.broadcast %2 : vector<3x1xf32> to vector<3x16xf32>
    %32 = arith.mulf %31, %28 : vector<3x16xf32>
    %cst_9 = arith.constant dense<0.000000e+00> : vector<16xf32>
    %33 = vector.multi_reduction <add>, %32, %cst_9 [0] : vector<3x16xf32> to vector<16xf32>
    %34 = vector.shape_cast %33 : vector<16xf32> to vector<1x16xf32>
    %35 = math.exp %30 : vector<1x16xf32>
    %cst_10 = arith.constant 1.000000e+00 : f32
    %36 = vector.broadcast %cst_10 : f32 to vector<1x16xf32>
    %37 = arith.subf %36, %35 : vector<1x16xf32>
    %cst_11 = arith.constant 0.000000e+00 : f32
    %38 = vector.broadcast %cst_11 : f32 to vector<1x16xf32>
    %39 = arith.maximumf %37, %38 : vector<1x16xf32>
    %40 = arith.mulf %39, %39 : vector<1x16xf32>
    %cst_12 = arith.constant 0.000000e+00 : f32
    %41 = vector.broadcast %cst_12 : f32 to vector<1x16xf32>
    %42 = arith.subf %41, %34 : vector<1x16xf32>
    %43 = arith.mulf %42, %40 : vector<1x16xf32>
    %cst_13 = arith.constant 0.000000e+00 : f32
    %44 = vector.broadcast %cst_13 : f32 to vector<1x16xf32>
    %45 = arith.select %8, %43, %44 : vector<1x16xi1>, vector<1x16xf32>
    %46 = vector.shape_cast %45 : vector<1x16xf32> to vector<1x1x16xf32>
    %cst_14 = arith.constant dense<0.000000e+00> : vector<1xf32>
    %47 = vector.multi_reduction <add>, %46, %cst_14 [1, 2] : vector<1x1x16xf32> to vector<1xf32>
    %48 = vector.shape_cast %47 : vector<1xf32> to vector<1x1x1xf32>
    %49 = vector.extract %48[0, 0, 0] : f32 from vector<1x1x1xf32>
    %50 = tpu.iota {dimensions = array<i32: 2>} : vector<1x1x128xi32>
    %c0_i32 = arith.constant 0 : i32
    %51 = vector.broadcast %c0_i32 : i32 to vector<1x1x128xi32>
    %52 = arith.cmpi eq, %50, %51 : vector<1x1x128xi32>
    %cst_15 = arith.constant 0.000000e+00 : f32
    %53 = vector.broadcast %49 : f32 to vector<1x1x128xf32>
    %54 = vector.broadcast %cst_15 : f32 to vector<1x1x128xf32>
    %55 = arith.select %52, %53, %54 : vector<1x1x128xi1>, vector<1x1x128xf32>
    %c0_16 = arith.constant 0 : index
    %c0_17 = arith.constant 0 : index
    %c0_18 = arith.constant 0 : index
    %56 = vector.load %arg4[%c0_16, %c0_17, %c0_18] : memref<1x1x128xf32, #tpu.memory_space<vmem>>, vector<1x1x128xf32>
    tpu.vector_store %arg4[%c0_16, %c0_17, %c0_18], %55 {strides = array<i32>} : memref<1x1x128xf32, #tpu.memory_space<vmem>>, vector<1x1x128xf32>,
    return
  }
  func.func @transform_0(%arg0: i32) -> (i32, i32) {
    %c0_i32 = arith.constant 0 : i32
    %c0_i32_0 = arith.constant 0 : i32
    return %c0_i32, %arg0 : i32, i32
  }
  func.func @transform_1(%arg0: i32) -> (i32, i32) {
    %c0_i32 = arith.constant 0 : i32
    %c0_i32_0 = arith.constant 0 : i32
    return %c0_i32, %arg0 : i32, i32
  }
  func.func @transform_2(%arg0: i32) -> (i32, i32) {
    %c0_i32 = arith.constant 0 : i32
    %c0_i32_0 = arith.constant 0 : i32
    %c0_i32_1 = arith.constant 0 : i32
    return %c0_i32, %c0_i32_0 : i32, i32
  }
  func.func @transform_3(%arg0: i32) -> (i32, i32, i32) {
    %c0_i32 = arith.constant 0 : i32
    %c0_i32_0 = arith.constant 0 : i32
    %c0_i32_1 = arith.constant 0 : i32
    return %arg0, %c0_i32, %c0_i32_0 : i32, i32, i32
  }
}

</mosaic_0001>

<bundles_post_ra>
// kernel: tpu_custom_call.1
= control target key start
LH: loop header
LB: loop body
LE: loop exit
PB: predicated region body
PF: predicated region fallthrough
CT: control target
= control target key end

     0   :  { %v154_v1 = vmov 0   ;;  %s201_s0 = inlined_call_operand.vmem [shape: f32[3,16], index: 0, kind: input, shape index: {}]   ;;  %s202_s1 = inlined_call_operand.vmem [shape: s32[1,16], index: 1, kind: input, shape index: {}]   ;;  %s203_s2 = inlined_call_operand.vmem [shape: f32[3,1], index: 2, kind: input, shape index: {}]   ;;  %s204_s3 = inlined_call_operand.hbm [shape: f32[1,1,128], index: 3, kind: output, shape index: {}]  }
   0x1   :  { %v17_v0 = vld [vmem:[%s203_s2] sm:$0x7]  ;;  %120 = vset.pattern.permute.xlu0 %v154_v1 }
   0x2   :  { %8 = vsyncpa [#allocation3], 0  ;;  %64 = vperm.xlu0 %120, %v17_v0   ;;  %v18_v2 = vlaneseq  ;;  %vm27_vm1 = vcmask 124928   ;;  %v15_v4 = vld [vmem:[%s201_s0] sm:$0x7]  ;;  %v155_v28 = vmov 0.0  }
   0x3   :  { %v121_v25 = vld [vmem:[%s202_s1] ss:$0 sm:$0xff]  ;;  %vm83_vm3 = vcmask 122880   ;;  %s156_s1 = smov [#allocation2]   ;;  %s105_s19 = sshll.u32 %s204_s3, 4  ;;  %s106_s19 = int_to_ptr.hbm [resolvable:$true] %s105_s19 }
   0x4   :  { %v180_v3 = vand.u32 127, %v18_v2  ;;  %v49_v24 = vshrl.u32 %v18_v2, 7  ;;  %s103_s16 = sshll.u32 %s156_s1, 4  ;;  %s104_s16 = int_to_ptr.vmem [resolvable:$true] %s103_s16 }
   0x6   :  { %vm23_vm0 = vcmp.lt.s32.totalorder %v180_v3, 16  ;;  %vm51_vm2 = vcmp.eq.s32.totalorder %v49_v24, %v121_v25  ;;  %vm94_vm4 = vcmp.eq.s32.totalorder %v180_v3, 0 }
   0x7   :  { %v26_v5 = vsel %vm23_vm0, %v15_v4, 0.0  ;;  %v114_v29 = vsel %vm51_vm2, 1.0, %v155_v28 }
   0x8   :  { %v28_v6 = vsel %vm27_vm1, %v26_v5, -inf }
   0x9   :  { %v29_v7 = vrot.slane %v28_v6, 4 }
   0xb   :  { %v30_v8 = vmax.f32 %v28_v6, %v29_v7 }
   0xd   :  { %v31_v9 = vrot.slane %v30_v8, 2 }
   0xf   :  { %v32_v10 = vmax.f32 %v30_v8, %v31_v9 }
  0x11   :  { %v33_v11 = vrot.slane %v32_v10, 1 }
  0x13   :  { %v34_v12 = vmax.f32 %v32_v10, %v33_v11 }
  0x15   :  { %v35_v13 = vsub.f32 %v26_v5, %v34_v12 }
  0x17   :  { %v36_v14 = vmul.f32 1.442695, %v35_v13 }
  0x19   :  { %122 = vpow2.f32 %v36_v14 }
  0x1f   :  { %v123_v15 = vpop.eup %122 }
  0x20   :  { %v38_v16 = vsel %vm27_vm1, %v123_v15, 0.0 }
  0x21   :  { %v39_v17 = vrot.slane %v38_v16, 4 }
  0x23   :  { %v40_v18 = vadd.f32 %v39_v17, %v38_v16 }
  0x25   :  { %v41_v19 = vrot.slane %v40_v18, 2 }
  0x27   :  { %v42_v20 = vadd.f32 %v41_v19, %v40_v18 }
  0x29   :  { %v43_v21 = vrot.slane %v42_v20, 1 }
  0x2b   :  { %v44_v22 = vadd.f32 %v43_v21, %v42_v20 }
  0x2d   :  { %124 = vlog2.f32 %v44_v22 }
  0x33   :  { %v125_v23 = vpop.eup %124 }
  0x34   :  { %v46_v26 = vmul.f32 0.6931472, %v125_v23 }
  0x36   :  { %v47_v27 = vsub.f32 %v35_v13, %v46_v26 }
  0x38   :  { %v54_v30 = vmul.f32 %v114_v29, %v47_v27 }
  0x3a   :  { %v55_v31 = vsel %vm27_vm1, %v54_v30, 0.0 }
  0x3b   :  { %v56_v32 = vrot.slane %v55_v31, 4 }
  0x3d   :  { %v57_v33 = vadd.f32 %v56_v32, %v55_v31 }
  0x3f   :  { %v58_v34 = vrot.slane %v57_v33, 2 }
  0x41   :  { %v59_v35 = vadd.f32 %v58_v34, %v57_v33 }
  0x43   :  { %v60_v36 = vrot.slane %v59_v35, 1 }
  0x45   :  { %v61_v37 = vadd.f32 %v60_v36, %v59_v35 }
  0x47   :  { %v75_v38 = vmul.f32 1.442695, %v61_v37 }
  0x49   :  { %126 = vpow2.f32 %v75_v38 }
  0x4f   :  { %v127_v41 = vpop.eup %126 }
  0x50   :  { %v77_v45 = vsub.f32 1.0, %v127_v41 }
  0x52   :  { %v78_v48 = vmax.f32 %v77_v45, 0.0 }
  0x54   :  { %v79_v51 = vmul.f32 %v78_v48, %v78_v48 }
  0x74   :  { %v65_v39 = vpop.permute.xlu0 %64 }
  0x75   :  { %v67_v40 = vmul.f32 %v65_v39, %v54_v30 }
  0x77   :  { %v68_v42 = vsel %vm27_vm1, %v67_v40, 0.0 }
  0x78   :  { %v69_v43 = vrot.slane %v68_v42, 4 }
  0x7a   :  { %v70_v44 = vadd.f32 %v69_v43, %v68_v42 }
  0x7c   :  { %v71_v46 = vrot.slane %v70_v44, 2 }
  0x7e   :  { %v72_v47 = vadd.f32 %v71_v46, %v70_v44 }
  0x80   :  { %v73_v49 = vrot.slane %v72_v47, 1 }
  0x82   :  { %v74_v50 = vadd.f32 %v73_v49, %v72_v47 }
  0x84   :  { %v80_v52 = vsub.f32 0.0, %v74_v50 }
  0x86   :  { %v81_v53 = vmul.f32 %v80_v52, %v79_v51 }
  0x88   :  { %v82_v54 = vsel %vm23_vm0, %v81_v53, 0.0 }
  0x89   :  { %v84_v55 = vsel %vm83_vm3, %v82_v54, 0.0 }
  0x8a   :  { %85 = vadd.xlane.f32.xlu0 %v84_v55 }
  0xfd   :  { %v86_v56 = vpop.xlane.xlu0 %85 }
  0xfe   :  { %v87_v57 = vrot.slane %v86_v56, 4 }
 0x100   :  { %v88_v58 = vadd.f32 %v87_v57, %v86_v56 }
 0x102   :  { %v89_v59 = vrot.slane %v88_v58, 2 }
 0x104   :  { %v90_v60 = vadd.f32 %v89_v59, %v88_v58 }
 0x106   :  { %v91_v61 = vrot.slane %v90_v60, 1 }
 0x108   :  { %v92_v62 = vadd.f32 %v91_v61, %v90_v60 }
 0x10a   :  { %115 = vpush %v92_v62 }
 0x13b   :  { %s116_s20 = spop %115 }
 0x13c   :  { %v95_v63 = vstv %s116_s20 }
 0x13d   :  { %v96_v0 = vsel %vm94_vm4, %v95_v63, 0.0 }
 0x13e   :  { %97 = vst [vmem:[#allocation2] sm:$0x1] %v96_v0 }
 0x13f   :  { %108 = dma.vmem_to_hbm [thread:$0]  %s104_s16, 16, %s106_s19, [#allocation3]  }
 0x140   :  { %152 = dma.done.wait [#allocation3], 16  }
 0x141   :  { %153 = vsyncadd [#allocation3], 4294967280 }
 0x142   :  { %113 = vsyncpa [#allocation3], 1 }

</bundles_post_ra>
